<compile_context>
chip_gen: v7x
topology: tpu7x:2x2x1
jax: 0.10.0
libtpu: 0.0.40
codegen_flags: <defaults>
</compile_context>

<pallas_src>
import jax
import jax.numpy as jnp
from jax.experimental import pallas as pl
from jax.experimental.pallas import tpu as pltpu


# ----------------------------- Pallas kernel --------------------------------

def _sigmoid(x):
    # 1/(1+exp(-x)); approximate EUP reciprocal (~2^-12 rel. error). Use
    # approx=False if bit-level parity with torch.sigmoid is required.
    return pl.reciprocal(1.0 + jnp.exp(-x), approx=True)


def gwvae_forward(xsum_blk, m4_flat, w_big, slab, *, ncount, nfeature, nclass):
    """Fused GWVAE forward: 4 WaveletGraphConv layers + sampling + both decoders.

    xsum_blk : (B, B*N) bf16  block-diagonal feature sums (xsum[b] at lane block b)
    m4_flat  : (B*N, 4N) bf16 stacked (anorm[b] @ phi[b]) with the 4 diag
                              filters folded in (cols = [x_mu|x_logvar|a_mu|a_logvar])
    w_big    : (R, W)   bf16  merged decoder weight, R = 2N+C padded to %8,
                              W = N*F + 2*N*N, cols = [fc_x | fc_a rows | fc_a cols]
    slab     : (>=1+B, W) f32 row 0 = merged bias; rows 1:1+B = [eps_x|eps_a|y]
    returns  : (B, OUT) f32   [recon_x (N*F) | recon_a (N*N) | x_mu,x_logvar,
                              a_mu,a_logvar (4N) | zero pad], OUT padded to %128
    """
    batch = xsum_blk.shape[0]
    n = ncount
    nf = ncount * nfeature
    nn = ncount * ncount
    wide = nf + 2 * nn
    rows = w_big.shape[0]
    out_used = nf + nn + 4 * n
    out_w = pl.cdiv(out_used, 128) * 128

    assert w_big.shape[1] == wide and slab.shape[1] == wide
    assert xsum_blk.shape == (batch, batch * n)
    assert m4_flat.shape == (batch * n, 4 * n)
    assert rows >= 2 * n + nclass and rows % 8 == 0
    assert slab.shape[0] >= 1 + batch

    def kernel(xsum_ref, m4_ref, wbig_ref, slab_ref, out_ref, stage_sc):
        # ------- encoder: all four WaveletGraphConv layers in ONE dot -------
        # sum_f(diag*(phi@anorm@x)) == diag * (xsum @ anorm @ phi)  (anorm/phi
        # symmetric); the batched matvecs + the 4 diag filters are one
        # block-diagonal matmul against the host-folded M4.
        wgc = jnp.dot(xsum_ref[...], m4_ref[...],
                      preferred_element_type=jnp.float32)          # (B, 4N)
        x_mu = wgc[:, 0 * n:1 * n]                                  # conv_x1
        x_logvar = wgc[:, 1 * n:2 * n]                              # conv_x2
        a_mu = wgc[:, 2 * n:3 * n]                                  # conv_a1
        a_logvar = wgc[:, 3 * n:4 * n]                              # conv_a2
        # TODO(synk): F.dropout(p=args.dropout) omitted; only valid for dropout == 0.

        # --------------------- sampling (reparameterization) ----------------
        eps_x = slab_ref[1:1 + batch, 0:n]                          # (B, N)
        eps_a = slab_ref[1:1 + batch, n:2 * n]                      # (B, N)
        ys = slab_ref[1:1 + batch, 2 * n:2 * n + nclass]            # (B, C)
        xz = x_mu + eps_x * jnp.exp(0.5 * x_logvar)
        az = a_mu + eps_a * jnp.exp(0.5 * a_logvar)

        # ------------- decoders: ONE merged matmul + elementwise ------------
        # cat([z, y]) for fc_x, fc_a, and the N x N outer-product row/col
        # broadcasts are all folded into wbig host-side; stage [xz|az|y|0] at
        # static lane offsets and issue a single dot.
        stage_sc[...] = jnp.zeros((batch, rows), jnp.float32)
        stage_sc[:, 0:n] = xz
        stage_sc[:, n:2 * n] = az
        stage_sc[:, 2 * n:2 * n + nclass] = ys
        h = jnp.dot(stage_sc[...].astype(jnp.bfloat16), wbig_ref[...],
                    preferred_element_type=jnp.float32)             # (B, W)
        h = h + slab_ref[0:1, :]                                    # merged bias

        # ---------------- single lane-dense output slab ---------------------
        out_ref[:, 0:nf] = _sigmoid(h[:, 0:nf])                     # recon_x
        out_ref[:, nf:nf + nn] = _sigmoid(h[:, nf:nf + nn]
                                          * h[:, nf + nn:wide])     # recon_a
        out_ref[:, nf + nn:nf + nn + 4 * n] = wgc                   # mu/logvar
        if out_w > out_used:
            out_ref[:, out_used:] = jnp.zeros((batch, out_w - out_used),
                                              jnp.float32)

    return pl.pallas_call(
        kernel,
        out_shape=jax.ShapeDtypeStruct((batch, out_w), jnp.float32),
        scratch_shapes=[pltpu.VMEM((batch, rows), jnp.float32)],
    )(xsum_blk, m4_flat, w_big, slab)


# ---------------- host-side operand folding / packing (plain JAX) -----------

def pack_gwvae_operands(anorm, phi, feats, diag_all, ys, eps_x, eps_a,
                        wx, bx, wa, ba, *, ncount, nfeature, nclass):
    batch = anorm.shape[0]
    n, c = ncount, nclass
    nf, nn = n * nfeature, n * n
    wide = nf + 2 * nn

    # --- encoder: M[b] = anorm[b] @ phi[b]; fold the 4 diag filters into it ---
    m = jnp.einsum('bij,bjk->bik', anorm, phi)                       # (B, N, N)
    # w_diag[k, j*N + m] = diag_all[j, m] * [k == m]
    w_diag = (jnp.eye(n, dtype=jnp.float32)[None, :, :]
              * diag_all[:, None, :]).transpose(1, 0, 2).reshape(n, 4 * n)
    m4_flat = (m.reshape(batch * n, n) @ w_diag).astype(jnp.bfloat16)  # (B*N, 4N)

    xsum = jnp.sum(feats, axis=2)                                    # (B, N)
    xsum_blk = (jnp.eye(batch, dtype=jnp.float32)[:, :, None]
                * xsum[:, None, :]).reshape(batch, batch * n).astype(jnp.bfloat16)

    # --- decoder: fold p_rep / s_til and the y-parts + biases into ONE weight --
    eye_n = jnp.eye(n, dtype=jnp.float32)
    p_rep = jnp.repeat(eye_n, n, axis=1)          # (N, N*N): col k <- row k//N
    s_til = jnp.tile(eye_n, (1, n))               # (N, N*N): col k <- row k%N
    wxz, wxy = wx[:n], wx[n:]
    waz, way = wa[:n], wa[n:]
    rows = -(-(2 * n + c) // 8) * 8
    w_big = jnp.zeros((rows, wide), jnp.float32)
    w_big = w_big.at[0:n, 0:nf].set(wxz)
    w_big = w_big.at[n:2 * n, nf:nf + nn].set(waz @ p_rep)
    w_big = w_big.at[n:2 * n, nf + nn:].set(waz @ s_til)
    w_big = w_big.at[2 * n:2 * n + c, 0:nf].set(wxy)
    w_big = w_big.at[2 * n:2 * n + c, nf:nf + nn].set(way @ p_rep)
    w_big = w_big.at[2 * n:2 * n + c, nf + nn:].set(way @ s_til)
    w_big = w_big.astype(jnp.bfloat16)
    b_big = jnp.concatenate([bx, ba @ p_rep, ba @ s_til], axis=1)    # (1, W)

    # --- single small-operand slab: merged bias / eps noise / labels ---
    slab_rows = max(8, -(-(1 + batch) // 8) * 8)
    slab = jnp.zeros((slab_rows, wide), jnp.float32)
    slab = slab.at[0, :].set(b_big[0])
    slab = slab.at[1:1 + batch, 0:n].set(eps_x)
    slab = slab.at[1:1 + batch, n:2 * n].set(eps_a)
    slab = slab.at[1:1 + batch, 2 * n:2 * n + c].set(ys)
    return xsum_blk, m4_flat, w_big, slab


# ------------------------ plain-JAX glue (graph prep) ------------------------

def _normalized_adjacency(adj):
    """D^-1/2 (A + I) D^-1/2, matching add_remaining_self_loops + deg^-0.5 norm."""
    n = adj.shape[0]
    a = adj + jnp.eye(n, dtype=adj.dtype)
    deg = jnp.sum(a, axis=1)
    dinv = jnp.where(deg > 0, jax.lax.rsqrt(deg), 0.0)
    return dinv[:, None] * a * dinv[None, :]


def _heat_wavelet(adj, scales):
    # TODO(synk): pygsp.filters.Heat.compute_frame uses a Chebyshev approximation
    # with an estimated lmax; here we use the exact heat kernel via eigh of the
    # combinatorial Laplacian (eigendecomposition has no clean Pallas equivalent).
    deg = jnp.sum(adj, axis=1)
    lap = jnp.diag(deg) - adj
    lam, u = jnp.linalg.eigh(lap)
    lmax = jnp.maximum(jnp.max(lam), 1e-12)
    phi = jnp.zeros_like(adj)
    for i in range(scales.shape[0]):
        g = jnp.exp(-scales[i] * lam / lmax)
        phi = phi + (u * g[None, :]) @ u.T
    return phi


def _pad_square(m, n_total):
    n = m.shape[0]
    return jnp.pad(m, ((0, n_total - n), (0, n_total - n)))


def _pad_rows(m, n_total):
    n = m.shape[0]
    return jnp.pad(m, ((0, n_total - n), (0, 0)))


# --------------------------------- driver ------------------------------------

if __name__ == "__main__":
    NCOUNT, NFEATURE, NCLASS, NSCALE = 16, 8, 4, 2
    NUM_NODES = [16, 12]        # heterogeneous graph sizes; ncount = max = 16
    B = len(NUM_NODES)

    key = jax.random.PRNGKey(0)
    keys = jax.random.split(key, 16)

    # ---- parameters (deterministic init mimicking the torch inits) ----
    scales = jax.random.uniform(keys[0], (NSCALE,), jnp.float32)                  # torch.rand(1) each
    diag_all = jax.random.uniform(keys[1], (4, NCOUNT), jnp.float32, 0.9, 1.1)    # conv_x1,x2,a1,a2

    fan_in = NCOUNT + NCLASS
    kk = 1.0 / float(fan_in) ** 0.5
    wx = jax.random.uniform(keys[2], (fan_in, NCOUNT * NFEATURE), jnp.float32, -kk, kk)
    bx = jax.random.uniform(keys[3], (1, NCOUNT * NFEATURE), jnp.float32, -kk, kk)
    wa = jax.random.uniform(keys[4], (fan_in, NCOUNT), jnp.float32, -kk, kk)
    ba = jax.random.uniform(keys[5], (1, NCOUNT), jnp.float32, -kk, kk)

    # ---- deterministic synthetic batch of graphs ----
    anorm_list, phi_list, feat_list = [], [], []
    for i, n_i in enumerate(NUM_NODES):
        gk = jax.random.fold_in(keys[6], i)
        upper = jnp.triu(jax.random.bernoulli(gk, 0.4, (n_i, n_i)).astype(jnp.float32), k=1)
        adj = upper + upper.T
        feat = jax.random.normal(jax.random.fold_in(keys[7], i), (n_i, NFEATURE), jnp.float32)
        anorm_list.append(_pad_square(_normalized_adjacency(adj), NCOUNT))
        phi_list.append(_pad_square(_heat_wavelet(adj, scales), NCOUNT))
        feat_list.append(_pad_rows(feat, NCOUNT))
    anorm = jnp.stack(anorm_list)                          # (B, N, N)
    phi = jnp.stack(phi_list)                              # (B, N, N)
    feats = jnp.stack(feat_list)                           # (B, N, F)
    ys = jax.random.normal(keys[8], (B, NCLASS), jnp.float32)

    # reparameterization noise (torch.randn_like -> deterministic jax.random)
    eps_x = jax.random.normal(keys[9], (B, NCOUNT), jnp.float32)
    eps_a = jax.random.normal(keys[10], (B, NCOUNT), jnp.float32)

    # ---- host-side folding/packing -> 4 kernel operands ----
    xsum_blk, m4_flat, w_big, slab = pack_gwvae_operands(
        anorm, phi, feats, diag_all, ys, eps_x, eps_a, wx, bx, wa, ba,
        ncount=NCOUNT, nfeature=NFEATURE, nclass=NCLASS)

    # ---- single fused Pallas call: encoder + sampling + both decoders ----
    out = gwvae_forward(xsum_blk, m4_flat, w_big, slab,
                        ncount=NCOUNT, nfeature=NFEATURE, nclass=NCLASS)

    nf, nn = NCOUNT * NFEATURE, NCOUNT * NCOUNT
    recon_x_flat = out[:, 0:nf]
    recon_a_flat = out[:, nf:nf + nn]
    wgc = out[:, nf + nn:nf + nn + 4 * NCOUNT]
    x_mu = wgc[:, 0 * NCOUNT:1 * NCOUNT]
    x_logvar = wgc[:, 1 * NCOUNT:2 * NCOUNT]
    a_mu = wgc[:, 2 * NCOUNT:3 * NCOUNT]
    a_logvar = wgc[:, 3 * NCOUNT:4 * NCOUNT]

    # per-graph slicing / reshape, exactly as in decoder_x / decoder_a
    recon_a_full = recon_a_flat.reshape(B, NCOUNT, NCOUNT)
    recon_x = [recon_x_flat[i].reshape(NCOUNT, NFEATURE)[:n_i]
               for i, n_i in enumerate(NUM_NODES)]
    recon_a = [recon_a_full[i, :n_i, :n_i] for i, n_i in enumerate(NUM_NODES)]

    outputs = recon_x + recon_a + [x_mu, x_logvar, a_mu, a_logvar]
    for t in outputs:
        jax.block_until_ready(t)
    print("KERNEL_OK")
</pallas_src>

<mosaic_0001>
module attributes {stable_mosaic.version = 11 : i64} {
  func.func @kernel(%arg0: memref<2x32xbf16, #tpu.memory_space<vmem>>, %arg1: memref<32x64xbf16, #tpu.memory_space<vmem>>, %arg2: memref<40x640xbf16, #tpu.memory_space<vmem>>, %arg3: memref<8x640xf32, #tpu.memory_space<vmem>>, %arg4: memref<2x512xf32, #tpu.memory_space<vmem>>, %arg5: memref<2x40xf32, #tpu.memory_space<vmem>>) attributes {dimension_semantics = [], scalar_prefetch = 0 : i64, scratch_operands = 1 : i64, tpu.core_type = #tpu.core_type<tc>} {
    %c0 = arith.constant 0 : index
    %c0_0 = arith.constant 0 : index
    %0 = vector.load %arg0[%c0, %c0_0] : memref<2x32xbf16, #tpu.memory_space<vmem>>, vector<2x32xbf16>
    %c0_1 = arith.constant 0 : index
    %c0_2 = arith.constant 0 : index
    %1 = vector.load %arg1[%c0_1, %c0_2] : memref<32x64xbf16, #tpu.memory_space<vmem>>, vector<32x64xbf16>
    %cst = arith.constant dense<0.000000e+00> : vector<2x64xf32>
    %2 = tpu.matmul %0, %1, %cst {dimension_numbers = #tpu.dot_dimension_numbers<[1], [0], [0], [1], [0, 0, 1, 1], [], []>} : vector<2x32xbf16>, vector<32x64xbf16>, vector<2x64xf32> -> vector<2x64xf32>
    %3 = vector.extract_strided_slice %2 {offsets = [0, 0], sizes = [2, 16], strides = [1, 1]} : vector<2x64xf32> to vector<2x16xf32>
    %4 = vector.extract_strided_slice %2 {offsets = [0, 16], sizes = [2, 16], strides = [1, 1]} : vector<2x64xf32> to vector<2x16xf32>
    %5 = vector.extract_strided_slice %2 {offsets = [0, 32], sizes = [2, 16], strides = [1, 1]} : vector<2x64xf32> to vector<2x16xf32>
    %6 = vector.extract_strided_slice %2 {offsets = [0, 48], sizes = [2, 16], strides = [1, 1]} : vector<2x64xf32> to vector<2x16xf32>
    %c1 = arith.constant 1 : index
    %c0_3 = arith.constant 0 : index
    %7 = vector.load %arg3[%c1, %c0_3] : memref<8x640xf32, #tpu.memory_space<vmem>>, vector<2x16xf32>
    %c1_4 = arith.constant 1 : index
    %c16 = arith.constant 16 : index
    %8 = vector.load %arg3[%c1_4, %c16] : memref<8x640xf32, #tpu.memory_space<vmem>>, vector<2x16xf32>
    %c1_5 = arith.constant 1 : index
    %c32 = arith.constant 32 : index
    %9 = vector.load %arg3[%c1_5, %c32] : memref<8x640xf32, #tpu.memory_space<vmem>>, vector<2x4xf32>
    %cst_6 = arith.constant 5.000000e-01 : f32
    %10 = vector.broadcast %cst_6 : f32 to vector<2x16xf32>
    %11 = arith.mulf %10, %4 : vector<2x16xf32>
    %12 = math.exp %11 : vector<2x16xf32>
    %13 = arith.mulf %7, %12 : vector<2x16xf32>
    %14 = arith.addf %3, %13 : vector<2x16xf32>
    %cst_7 = arith.constant 5.000000e-01 : f32
    %15 = vector.broadcast %cst_7 : f32 to vector<2x16xf32>
    %16 = arith.mulf %15, %6 : vector<2x16xf32>
    %17 = math.exp %16 : vector<2x16xf32>
    %18 = arith.mulf %8, %17 : vector<2x16xf32>
    %19 = arith.addf %5, %18 : vector<2x16xf32>
    %cst_8 = arith.constant 0.000000e+00 : f32
    %20 = vector.broadcast %cst_8 : f32 to vector<2x40xf32>
    %c0_9 = arith.constant 0 : index
    %c0_10 = arith.constant 0 : index
    %21 = vector.load %arg5[%c0_9, %c0_10] : memref<2x40xf32, #tpu.memory_space<vmem>>, vector<2x40xf32>
    tpu.vector_store %arg5[%c0_9, %c0_10], %20 {strides = array<i32>} : memref<2x40xf32, #tpu.memory_space<vmem>>, vector<2x40xf32>,
    %c0_11 = arith.constant 0 : index
    %c0_12 = arith.constant 0 : index
    %22 = vector.load %arg5[%c0_11, %c0_12] : memref<2x40xf32, #tpu.memory_space<vmem>>, vector<2x16xf32>
    tpu.vector_store %arg5[%c0_11, %c0_12], %14 {strides = array<i32>} : memref<2x40xf32, #tpu.memory_space<vmem>>, vector<2x16xf32>,
    %c0_13 = arith.constant 0 : index
    %c16_14 = arith.constant 16 : index
    %23 = vector.load %arg5[%c0_13, %c16_14] : memref<2x40xf32, #tpu.memory_space<vmem>>, vector<2x16xf32>
    tpu.vector_store %arg5[%c0_13, %c16_14], %19 {strides = array<i32>} : memref<2x40xf32, #tpu.memory_space<vmem>>, vector<2x16xf32>,
    %c0_15 = arith.constant 0 : index
    %c32_16 = arith.constant 32 : index
    %24 = vector.load %arg5[%c0_15, %c32_16] : memref<2x40xf32, #tpu.memory_space<vmem>>, vector<2x4xf32>
    tpu.vector_store %arg5[%c0_15, %c32_16], %9 {strides = array<i32>} : memref<2x40xf32, #tpu.memory_space<vmem>>, vector<2x4xf32>,
    %c0_17 = arith.constant 0 : index
    %c0_18 = arith.constant 0 : index
    %25 = vector.load %arg5[%c0_17, %c0_18] : memref<2x40xf32, #tpu.memory_space<vmem>>, vector<2x40xf32>
    %26 = arith.truncf %25 : vector<2x40xf32> to vector<2x40xbf16>
    %c0_19 = arith.constant 0 : index
    %c0_20 = arith.constant 0 : index
    %27 = vector.load %arg2[%c0_19, %c0_20] : memref<40x640xbf16, #tpu.memory_space<vmem>>, vector<40x640xbf16>
    %cst_21 = arith.constant dense<0.000000e+00> : vector<2x640xf32>
    %28 = tpu.matmul %26, %27, %cst_21 {dimension_numbers = #tpu.dot_dimension_numbers<[1], [0], [0], [1], [0, 0, 1, 1], [], []>} : vector<2x40xbf16>, vector<40x640xbf16>, vector<2x640xf32> -> vector<2x640xf32>
    %c0_22 = arith.constant 0 : index
    %c0_23 = arith.constant 0 : index
    %29 = vector.load %arg3[%c0_22, %c0_23] : memref<8x640xf32, #tpu.memory_space<vmem>>, vector<1x640xf32>
    %30 = vector.broadcast %29 : vector<1x640xf32> to vector<2x640xf32>
    %31 = arith.addf %28, %30 : vector<2x640xf32>
    %32 = vector.extract_strided_slice %31 {offsets = [0, 0], sizes = [2, 128], strides = [1, 1]} : vector<2x640xf32> to vector<2x128xf32>
    %cst_24 = arith.constant 0.000000e+00 : f32
    %33 = vector.broadcast %cst_24 : f32 to vector<2x128xf32>
    %34 = arith.subf %33, %32 : vector<2x128xf32>
    %35 = math.exp %34 : vector<2x128xf32>
    %cst_25 = arith.constant 1.000000e+00 : f32
    %36 = vector.broadcast %cst_25 : f32 to vector<2x128xf32>
    %37 = arith.addf %36, %35 : vector<2x128xf32>
    %38 = tpu.reciprocal %37 {approx = true} : vector<2x128xf32> -> vector<2x128xf32>
    %c0_26 = arith.constant 0 : index
    %c0_27 = arith.constant 0 : index
    %39 = vector.load %arg4[%c0_26, %c0_27] : memref<2x512xf32, #tpu.memory_space<vmem>>, vector<2x128xf32>
    tpu.vector_store %arg4[%c0_26, %c0_27], %38 {strides = array<i32>} : memref<2x512xf32, #tpu.memory_space<vmem>>, vector<2x128xf32>,
    %40 = vector.extract_strided_slice %31 {offsets = [0, 128], sizes = [2, 256], strides = [1, 1]} : vector<2x640xf32> to vector<2x256xf32>
    %41 = vector.extract_strided_slice %31 {offsets = [0, 384], sizes = [2, 256], strides = [1, 1]} : vector<2x640xf32> to vector<2x256xf32>
    %42 = arith.mulf %40, %41 : vector<2x256xf32>
    %cst_28 = arith.constant 0.000000e+00 : f32
    %43 = vector.broadcast %cst_28 : f32 to vector<2x256xf32>
    %44 = arith.subf %43, %42 : vector<2x256xf32>
    %45 = math.exp %44 : vector<2x256xf32>
    %cst_29 = arith.constant 1.000000e+00 : f32
    %46 = vector.broadcast %cst_29 : f32 to vector<2x256xf32>
    %47 = arith.addf %46, %45 : vector<2x256xf32>
    %48 = tpu.reciprocal %47 {approx = true} : vector<2x256xf32> -> vector<2x256xf32>
    %c0_30 = arith.constant 0 : index
    %c128 = arith.constant 128 : index
    %49 = vector.load %arg4[%c0_30, %c128] : memref<2x512xf32, #tpu.memory_space<vmem>>, vector<2x256xf32>
    tpu.vector_store %arg4[%c0_30, %c128], %48 {strides = array<i32>} : memref<2x512xf32, #tpu.memory_space<vmem>>, vector<2x256xf32>,
    %c0_31 = arith.constant 0 : index
    %c384 = arith.constant 384 : index
    %50 = vector.load %arg4[%c0_31, %c384] : memref<2x512xf32, #tpu.memory_space<vmem>>, vector<2x64xf32>
    tpu.vector_store %arg4[%c0_31, %c384], %2 {strides = array<i32>} : memref<2x512xf32, #tpu.memory_space<vmem>>, vector<2x64xf32>,
    %cst_32 = arith.constant 0.000000e+00 : f32
    %51 = vector.broadcast %cst_32 : f32 to vector<2x64xf32>
    %c0_33 = arith.constant 0 : index
    %c448 = arith.constant 448 : index
    %52 = vector.load %arg4[%c0_33, %c448] : memref<2x512xf32, #tpu.memory_space<vmem>>, vector<2x64xf32>
    tpu.vector_store %arg4[%c0_33, %c448], %51 {strides = array<i32>} : memref<2x512xf32, #tpu.memory_space<vmem>>, vector<2x64xf32>,
    return
  }
}

</mosaic_0001>

<bundles_post_ra>
// kernel: tpu_custom_call.1
= control target key start
LH: loop header
LB: loop body
LE: loop exit
PB: predicated region body
PF: predicated region fallthrough
CT: control target
= control target key end

     0   :  { %9 = vsyncpa [#allocation4], 0  ;;  %s806_s0 = inlined_call_operand.hbm [shape: bf16[2,32], index: 0, kind: input, shape index: {}]   ;;  %s807_s1 = inlined_call_operand.hbm [shape: bf16[32,64], index: 1, kind: input, shape index: {}]   ;;  %s808_s2 = inlined_call_operand.hbm [shape: bf16[40,640], index: 2, kind: input, shape index: {}]   ;;  %s809_s3 = inlined_call_operand.hbm [shape: f32[8,640], index: 3, kind: input, shape index: {}]   ;;  %s810_s4 = inlined_call_operand.hbm [shape: f32[2,512], index: 4, kind: output, shape index: {}]  }
   0x1   :  { %10 = vsyncpa [#allocation7], 0 }
   0x2   :  { %11 = vsyncpa [#allocation10], 0 }
   0x3   :  { %12 = vsyncpa [#allocation5], 0  ;;  %s688_s15 = smov [#allocation6]   ;;  %s570_s19 = scalar_lea.hbm %s807_s1, 256 }
   0x4   :  { %s28_s16 = sshll.u32 %s688_s15, 4  ;;  %p571_p0 = scmp.ne.s32.totalorder %s807_s1, %s570_s19  ;;  %s29_s16 = int_to_ptr.vmem [resolvable:$true] %s28_s16 }
   0x5   :  { %p574_p1 = scmp.lt.u32.totalorder %s570_s19, %s807_s1 }
   0x7   :  { %p576_p2 = pnand %p574_p1, %p571_p0 }
   0x9   :  { %579 = shalt.err (!%p576_p2)
}
   0xa   :  { %s580_s24 = scalar_lea.vmem %s29_s16, 256  ;;  %p585_p4 = scmp.lt.s32.totalorder %s29_s16, %s29_s16 }
   0xb   :  { %p581_p3 = scmp.ne.s32.totalorder %s29_s16, %s580_s24  ;;  %p586_p5 = scmp.lt.s32.totalorder %s580_s24, %s580_s24 }
   0xd   :  { %p587_p6 = por %p586_p5, %p585_p4 }
   0xf   :  { %p588_p7 = pnand %p587_p6, %p581_p3 }
  0x11   :  { %591 = shalt.err (!%p588_p7)
}
  0x12   :  { %s689_s25 = smov 64   ;;  %s690_s26 = smov 4  }
  0x13   :  { %34 = dma.hbm_to_vmem [thread:$0]  %s807_s1, 256, %s29_s16, [#allocation7], %s689_s25, %s689_s25, %s690_s26  }
  0x14   :  { %s691_s29 = smov [#allocation3]   ;;  %s692_s5 = smov [#allocation8]  }
  0x15   :  { %s19_s30 = sshll.u32 %s691_s29, 4  ;;  %s40_s6 = sshll.u32 %s692_s5, 4  ;;  %s20_s30 = int_to_ptr.vmem [resolvable:$true] %s19_s30  ;;  %s41_s6 = int_to_ptr.vmem [resolvable:$true] %s40_s6 }
  0x16   :  { %s592_s9 = scalar_lea.hbm %s806_s0, 16 }
  0x17   :  { %p593_p8 = scmp.ne.s32.totalorder %s806_s0, %s592_s9  ;;  %p596_p9 = scmp.lt.u32.totalorder %s592_s9, %s806_s0 }
  0x19   :  { %p598_p10 = pnand %p596_p9, %p593_p8 }
  0x1b   :  { %601 = shalt.err (!%p598_p10)
}
  0x1c   :  { %s602_s1 = scalar_lea.vmem %s20_s30, 16  ;;  %s606_s14 = scalar_lea.vmem %s20_s30, 32 }
  0x1d   :  { %p603_p11 = scmp.ne.s32.totalorder %s20_s30, %s602_s1  ;;  %p607_p12 = scmp.lt.s32.totalorder %s20_s30, %s20_s30 }
  0x1e   :  { %p608_p13 = scmp.lt.s32.totalorder %s606_s14, %s602_s1 }
  0x20   :  { %p609_p0 = por %p608_p13, %p607_p12 }
  0x22   :  { %p610_p1 = pnand %p609_p0, %p603_p11 }
  0x24   :  { %613 = shalt.err (!%p610_p1)
}
  0x25   :  { %22 = dma.hbm_to_vmem [thread:$0]  %s806_s0, 16, %s20_s30, [#allocation4]  }
  0x26   :  { %s614_s19 = scalar_lea.hbm %s808_s2, 1600 }
  0x27   :  { %p615_p2 = scmp.ne.s32.totalorder %s808_s2, %s614_s19  ;;  %p618_p3 = scmp.lt.u32.totalorder %s614_s19, %s808_s2 }
  0x29   :  { %p620_p4 = pnand %p618_p3, %p615_p2 }
  0x2b   :  { %623 = shalt.err (!%p620_p4)
}
  0x2c   :  { %s624_s24 = scalar_lea.vmem %s41_s6, 1600  ;;  %p629_p6 = scmp.lt.s32.totalorder %s41_s6, %s41_s6 }
  0x2d   :  { %p625_p5 = scmp.ne.s32.totalorder %s41_s6, %s624_s24  ;;  %p630_p7 = scmp.lt.s32.totalorder %s624_s24, %s624_s24 }
  0x2f   :  { %p631_p8 = por %p630_p7, %p629_p6 }
  0x31   :  { %p632_p9 = pnand %p631_p8, %p625_p5 }
  0x33   :  { %635 = shalt.err (!%p632_p9)
}
  0x34   :  { %s693_s0 = smov 320   ;;  %s694_s25 = smov 20  }
  0x35   :  { %46 = dma.hbm_to_vmem [thread:$0]  %s808_s2, 1600, %s41_s6, [#allocation7], %s693_s0, %s693_s0, %s694_s25  }
  0x36   :  { %s695_s28 = smov [#allocation9]   ;;  %s636_s7 = scalar_lea.hbm %s809_s3, 640 }
  0x37   :  { %s53_s29 = sshll.u32 %s695_s28, 4  ;;  %p637_p10 = scmp.ne.s32.totalorder %s809_s3, %s636_s7  ;;  %s54_s29 = int_to_ptr.vmem [resolvable:$true] %s53_s29 }
  0x38   :  { %p640_p11 = scmp.lt.u32.totalorder %s636_s7, %s809_s3 }
  0x3a   :  { %p642_p12 = pnand %p640_p11, %p637_p10 }
  0x3c   :  { %645 = shalt.err (!%p642_p12)
}
  0x3d   :  { %s646_s12 = scalar_lea.vmem %s54_s29, 640  ;;  %p651_p0 = scmp.lt.s32.totalorder %s54_s29, %s54_s29 }
  0x3e   :  { %p647_p13 = scmp.ne.s32.totalorder %s54_s29, %s646_s12  ;;  %p652_p1 = scmp.lt.s32.totalorder %s646_s12, %s646_s12 }
  0x40   :  { %p653_p2 = por %p652_p1, %p651_p0 }
  0x42   :  { %p654_p3 = pnand %p653_p2, %p647_p13 }
  0x44   :  { %657 = shalt.err (!%p654_p3)
}
  0x45   :  { %56 = dma.hbm_to_vmem [thread:$0]  %s809_s3, 640, %s54_s29, [#allocation10]  }
  0x46   :  { %680 = dma.done.wait [#allocation4], 16  }
  0x47   :  { %681 = vsyncadd [#allocation4], 4294967280 }
  0x48   :  { %682 = dma.done.wait [#allocation7], 1856  }
  0x49   :  { %683 = vsyncadd [#allocation7], 4294965440 }
  0x4a   :  { %684 = dma.done.wait [#allocation10], 640  }
  0x4b   :  { %685 = vsyncadd [#allocation10], 4294966656  ;;  %v696_v0 = vmov 0.0   ;;  %vm697_vm0 = vmmov 0   ;;  %v535_v1 = vld [vmem:[#allocation6] sm:$0xff]   ;;  %v536_v2 = vld [vmem:[#allocation6 + $0x8] sm:$0xff]   ;;  %v188_v46 = vlaneseq }
  0x4c   :  { %502 = vmatprep.subr.bf16.mxu0 %v696_v0  ;;  %506 = vmatprep.mubr.msk.bf16.mxu0 %vm697_vm0, %v696_v0  ;;  %vm87_vm1 = vcmask 261120   ;;  %v70_v3 = vld [vmem:[#allocation3] sm:$0x1]  ;;  %vm450_vm2 = vcmask 517120   ;;  %vm155_vm3 = vcmask 320512   ;;  %s698_s3 = smov 112  }
  0x4d   :  { %503 = vmatpush3.bf16.msra.mxu0 %v535_v1  ;;  %156 = vst.msk [vmem:[#allocation2] sm:$0x3] %vm155_vm3, %v696_v0  ;;  %s699_s13 = smov 96   ;;  %v537_v12 = vld [vmem:[#allocation8 + $0x4] ss:$20 sps:$4 sm:$0xff]   ;;  %vm157_vm4 = vcmask 123904  }
  0x4e   :  { %504 = vmatprep.subr.bf16.mxu0 %v696_v0  ;;  %v539_v13 = vld [vmem:[#allocation8] ss:$20 sps:$4 sm:$0xff]   ;;  %v540_v14 = vld [vmem:[#allocation8 + $0x8] ss:$20 sps:$4 sm:$0xff]   ;;  %298 = vmatprep.subr.bf16.mxu1 %v537_v12  ;;  %v131_v16 = vld [vmem:[#allocation9] sm:$0x6] }
  0x4f   :  { %v542_v15 = vld [vmem:[#allocation8 + $0xc] ss:$20 sps:$4 sm:$0xff]   ;;  %299 = vmatpush1.bf16.msra.mxu1 %v539_v13  ;;  %s700_s1 = smov 16   ;;  %v545_v25 = vld [vmem:[#allocation8 + $0x28] ss:$20 sps:$4 sm:$0xff]   ;;  %v181_v28 = vld [vmem:[#allocation8 + $0x50] sm:$0xff] }
  0x50   :  { %v543_v24 = vld [vmem:[#allocation8 + $0x2c] ss:$20 sps:$4 sm:$0xff]   ;;  %v546_v26 = vld [vmem:[#allocation8 + $0x30] ss:$20 sps:$4 sm:$0xff]   ;;  %v548_v27 = vld [vmem:[#allocation8 + $0x34] ss:$20 sps:$4 sm:$0xff]   ;;  %v485_v30 = vcombine.high %v181_v28, %v181_v28  ;;  %v484_v31 = vcombine.low %v181_v28, %v181_v28 }
  0x51   :  { %505 = vmatpush3.bf16.msra.mxu0 %v536_v2  ;;  %300 = vmatprep.subr.bf16.mxu1 %v543_v24  ;;  %vm282_vm5 = vcmask 1043456   ;;  %v182_v29 = vld [vmem:[#allocation8 + $0x58] sm:$0xff]  ;;  %v701_v34 = vmov 0   ;;  %vm163_vm6 = vcmask 255104   ;;  %vm165_vm7 = vcmask 289025   ;;  %s702_s14 = smov [#allocation11]  }
  0x52   :  { %339 = vmatprep.subr.bf16.mxu0 %v542_v15  ;;  %v487_v32 = vcombine.high %v182_v29, %v182_v29  ;;  %v486_v33 = vcombine.low %v182_v29, %v182_v29  ;;  %330 = vmatprep.mubr.bf16.mxu1 %v701_v34  ;;  %v284_v35 = vsel %vm282_vm5, %v484_v31, 0  ;;  %vm278_vm8 = vcmask 326656   ;;  %v553_v41 = vld [vmem:[#allocation8 + $0x10] ss:$20 sps:$4 sm:$0xff]   ;;  %v554_v43 = vld [vmem:[#allocation8 + $0x38] ss:$20 sps:$4 sm:$0xff]  }
  0x53   :  { %301 = vmatpush1.bf16.msra.mxu1 %v545_v25  ;;  %v555_v44 = vld [vmem:[#allocation8 + $0x60] ss:$0 sps:$4 sm:$0xff]   ;;  %vm452_vm9 = vcmask 1041920   ;;  %v189_v47 = vshrl.u32 %v188_v46, 7  ;;  %s460_s15 = sshll.u32 %s702_s14, 4  ;;  %s461_s15 = int_to_ptr.vmem [resolvable:$true] %s460_s15 }
  0x54   :  { %507 = vmatmul.mubr.msk.bf16.vlgmr.msra.gmra.mrb[0].mxu0 %vm87_vm1, %v70_v3  ;;  %489 = vmatprep.subr.msk.bf16.mxu1 %vm282_vm5, %v485_v30  ;;  %v290_v36 = vsel %vm282_vm5, %v486_v33, 0  ;;  %v296_v45 = vsel %vm282_vm5, %v555_v44, 0  ;;  %v184_v48 = vld [vmem:[#allocation9] ss:$8 sm:$0xf]  ;;  %s658_s16 = scalar_lea.vmem %s461_s15, 128  ;;  %p663_p5 = scmp.lt.s32.totalorder %s461_s15, %s461_s15 }
  0x55   :  { %340 = vmatpush1.bf16.msra.mxu0 %v540_v14  ;;  %371 = vmatprep.mubr.bf16.mxu0 %v701_v34  ;;  %v185_v49 = vld [vmem:[#allocation9] ss:$8 sm:$0x10]  ;;  %v190_v51 = vsub.s32 0, %v189_v47  ;;  %v194_v52 = vsub.s32 1, %v189_v47  ;;  %v202_v53 = vsub.s32 3, %v189_v47  ;;  %p659_p4 = scmp.ne.s32.totalorder %s461_s15, %s658_s16  ;;  %p664_p6 = scmp.lt.s32.totalorder %s658_s16, %s658_s16 }
  0x56   :  { %341 = vmatprep.subr.bf16.mxu0 %v548_v27  ;;  %v186_v50 = vor.u32 %v185_v49, %v184_v48  ;;  %v198_v3 = vsub.s32 2, %v189_v47 }
  0x57   :  { %303 = vmatpush1.bf16.msra.mxu1 %v284_v35  ;;  %p665_p7 = por %p664_p6, %p663_p5 }
  0x58   :  { %510 = vmatprep.subr.bf16.mxu1 %v696_v0  ;;  %v191_v54 = vrot.slane %v186_v50, %v190_v51  ;;  %v195_v55 = vrot.slane %v186_v50, %v194_v52  ;;  %v203_v56 = vrot.slane %v186_v50, %v202_v53 }
  0x59   :  { %342 = vmatpush1.bf16.msra.mxu0 %v546_v26  ;;  %p666_p8 = pnand %p665_p7, %p659_p4 }
  0x5a   :  { %491 = vmatprep.subr.msk.bf16.mxu0 %vm282_vm5, %v487_v32 }
  0x5d   :  { %344 = vmatpush1.bf16.msra.mxu0 %v290_v36 }
 0x127   :  { %v125_v4 = vpop.f32.mrb[0].mxu0 }
 0x128   :  { %451 = vst.msk [vmem:[#allocation11 + $0x6] sm:$0x3] %vm450_vm2, %v125_v4  ;;  %v508_v5 = vpop.f32.mrb[1].mxu0  ;;  %v132_v6 = vmul.f32 0.5, %v125_v4 }
 0x129   :  { %v128_v7 = vpop.f32.mrb[2].mxu0  ;;  %453 = vst.msk [vmem:[#allocation11 + $0x6] sm:$0x3] %vm452_vm9, %v696_v0 }
 0x12a   :  { %v509_v8 = vpop.f32.mrb[3].mxu0  ;;  %v133_v9 = vmul.f32 1.442695, %v132_v6 }
 0x12b   :  { %v206_v8 = vsub.s32 4, %v189_v47 }
 0x12c   :  { %556 = vpow2.f32 %v133_v9  ;;  %v199_v9 = vrot.slane %v186_v50, %v198_v3 }
 0x136   :  { %v557_v10 = vpop.eup %556 }
 0x137   :  { %v136_v11 = vrot.slane %v557_v10, 7 }
 0x139   :  { %137 = vrot.lane.b32.xlu1 %v136_v11, %s698_s3  ;;  %145 = vrot.lane.b32.xlu0 %v136_v11, %s699_s13  ;;  %v207_v11 = vrot.slane %v186_v50, %v206_v8 }
 0x1ab   :  { %v138_v17 = vpop.permute.xlu1 %137  ;;  %v146_v18 = vpop.permute.xlu0 %145 }
 0x1ac   :  { %v140_v19 = vmul.f32 %v138_v17, %v131_v16  ;;  %v148_v20 = vmul.f32 %v146_v18, %v131_v16 }
 0x1ae   :  { %v142_v21 = vrot.slane %v140_v19, 1  ;;  %v150_v22 = vrot.slane %v148_v20, 1 }
 0x1b0   :  { %v144_v23 = vadd.f32 %v142_v21, %v125_v4  ;;  %151 = vrot.lane.b32.xlu0 %v150_v22, %s700_s1 }
 0x1b2   :  { %158 = vst.msk [vmem:[#allocation2] sm:$0x3] %vm157_vm4, %v144_v23 }
 0x222   :  { %v152_v37 = vpop.permute.xlu0 %151 }
 0x223   :  { %v154_v38 = vadd.f32 %v152_v37, %v125_v4 }
 0x225   :  { %160 = vrot.lane.b32.xlu1 %v154_v38, %s698_s3 }
 0x297   :  { %v161_v39 = vpop.permute.xlu1 %160 }
 0x298   :  { %164 = vst.msk [vmem:[#allocation2] sm:$0x3] %vm163_vm6, %v161_v39 }
 0x299   :  { %166 = vst.msk [vmem:[#allocation2 - $0x1] sm:$0x6] %vm165_vm7, %v131_v16 }
 0x2a0   :  { %v167_v40 = vld [vmem:[#allocation2] sm:$0x3] }
 0x2a1   :  { %v168_v42 = vpack.c.bf16 %v167_v40, %v167_v40 }
 0x2a3   :  { %490 = vmatmul.mubr.msk.bf16.vlgmr.msra.gmra.mrb[0].mxu1 %vm278_vm8, %v168_v42  ;;  %492 = vmatmul.mubr.msk.bf16.vlgmr.msra.gmra.mrb[4].mxu0 %vm278_vm8, %v168_v42 }
 0x2a4   :  { %511 = vmatpush3.bf16.msra.mxu1 %v553_v41  ;;  %516 = vmatprep.mubr.msk.bf16.mxu1 %vm697_vm0, %v696_v0 }
 0x2a5   :  { %512 = vmatprep.subr.bf16.mxu1 %v696_v0 }
 0x2a8   :  { %513 = vmatpush3.bf16.msra.mxu1 %v554_v43 }
 0x2a9   :  { %514 = vmatprep.subr.bf16.mxu1 %v696_v0 }
 0x2ac   :  { %515 = vmatpush3.bf16.msra.mxu1 %v296_v45 }
 0x2af   :  { %517 = vmatmul.mubr.msk.bf16.vlgmr.msra.gmra.mrb[4].mxu1 %vm278_vm8, %v168_v42 }
 0x376   :  { %v332_v57 = vpop.f32.mrb[0].mxu1  ;;  %v373_v58 = vpop.f32.mrb[4].mxu0 }
 0x377   :  { %v333_v59 = vadd.f32 %v332_v57, %v191_v54  ;;  %v334_v60 = vpop.f32.mrb[1].mxu1  ;;  %v375_v61 = vpop.f32.mrb[5].mxu0  ;;  %v374_v12 = vadd.f32 %v373_v58, %v199_v9 }
 0x378   :  { %v335_v62 = vadd.f32 %v334_v60, %v195_v55  ;;  %v376_v63 = vadd.f32 %v375_v61, %v203_v56  ;;  %v336_v1 = vpop.f32.mrb[2].mxu1  ;;  %v377_v0 = vpop.f32.mrb[6].mxu0 }
 0x379   :  { %v420_v2 = vsub.f32 0.0, %v333_v59  ;;  %v337_v4 = vpop.f32.mrb[3].mxu1  ;;  %v378_v5 = vpop.f32.mrb[7].mxu0 }
 0x37a   :  { %v426_v6 = vmul.f32 %v376_v63, %v335_v62 }
 0x37b   :  { %v421_v7 = vmul.f32 1.442695, %v420_v2 }
 0x37c   :  { %v428_v10 = vsub.f32 0.0, %v426_v6 }
 0x37d   :  { %558 = vpow2.f32 %v421_v7 }
 0x37e   :  { %v430_v13 = vmul.f32 1.442695, %v428_v10 }
 0x380   :  { %560 = vpow2.f32 %v430_v13 }
 0x382   :  { %v414_v14 = vpop.f32.mrb[4].mxu1 }
 0x383   :  { %v415_v15 = vadd.f32 %v414_v14, %v207_v11  ;;  %v518_v16 = vpop.f32.mrb[5].mxu1 }
 0x384   :  { %v417_v17 = vpop.f32.mrb[6].mxu1 }
 0x385   :  { %v427_v18 = vmul.f32 %v415_v15, %v374_v12  ;;  %v519_v19 = vpop.f32.mrb[7].mxu1 }
 0x387   :  { %v559_v20 = vpop.eup %558  ;;  %v429_v21 = vsub.f32 0.0, %v427_v18 }
 0x388   :  { %v423_v22 = vadd.f32 1.0, %v559_v20 }
 0x389   :  { %v432_v23 = vmul.f32 1.442695, %v429_v21 }
 0x38a   :  { %562 = vrcp.f32 %v423_v22  ;;  %v561_v24 = vpop.eup %560 }
 0x38b   :  { %564 = vpow2.f32 %v432_v23  ;;  %v434_v25 = vadd.f32 1.0, %v561_v24 }
 0x38d   :  { %566 = vrcp.f32 %v434_v25 }
 0x394   :  { %v563_v26 = vpop.eup %562 }
 0x395   :  { %v565_v27 = vpop.eup %564  ;;  %425 = vst [vmem:[#allocation11] sm:$0x3] %v563_v26 }
 0x396   :  { %v435_v28 = vadd.f32 1.0, %v565_v27 }
 0x397   :  { %v567_v29 = vpop.eup %566 }
 0x398   :  { %568 = vrcp.f32 %v435_v28 }
 0x3a2   :  { %v569_v30 = vpop.eup %568 }
 0x3a3   :  { %v440_v31 = vcombine.low %v567_v29, %v569_v30 }
 0x3a5   :  { %494 = vst.sshfl [vmem:[#allocation11 + $0x2] sm:$0x33 pattern:$0x76325410] %v440_v31 }
 0x3a6   :  { %669 = shalt.err (!%p666_p8)
}
 0x3a7   :  { %s670_s19 = scalar_lea.hbm %s810_s4, 128 }
 0x3a8   :  { %p671_p9 = scmp.ne.s32.totalorder %s810_s4, %s670_s19  ;;  %p674_p10 = scmp.lt.u32.totalorder %s670_s19, %s810_s4 }
 0x3aa   :  { %p676_p11 = pnand %p674_p10, %p671_p9 }
 0x3ac   :  { %679 = shalt.err (!%p676_p11)
}
 0x3ad   :  { %463 = dma.vmem_to_hbm [thread:$0]  %s461_s15, 128, %s810_s4, [#allocation5]  }
 0x3ae   :  { %686 = dma.done.wait [#allocation5], 128  }
 0x3af   :  { %687 = vsyncadd [#allocation5], 4294967168 }
 0x3b0   :  { %467 = vsyncpa [#allocation4], 1 }
 0x3b1   :  { %468 = vsyncpa [#allocation7], 1 }
 0x3b2   :  { %469 = vsyncpa [#allocation10], 1 }
 0x3b3   :  { %470 = vsyncpa [#allocation5], 1 }

</bundles_post_ra>
